<compile_context>
chip_gen: v7x
topology: tpu7x:2x2x1
jax: 0.10.0
libtpu: 0.0.40
codegen_flags: <defaults>
</compile_context>

<pallas_src>
import math

import jax
import jax.numpy as jnp
from jax import lax
from jax.experimental import pallas as pl
from jax.experimental.pallas import tpu as pltpu


# ----------------------------------------------------------------------------
# Generation-aware scoped-VMEM limit (64 MiB physical on v7x vs 128 MiB v5e/v6e).
# ----------------------------------------------------------------------------
def _vmem_limit_bytes():
    try:
        cap = pltpu.get_tpu_info().vmem_capacity_bytes
        return int(min(max(cap - (16 << 20), 32 << 20), 100 << 20))
    except Exception:
        return None


_VMEM_LIMIT = _vmem_limit_bytes()


def _cp(*dim_semantics):
    return pltpu.CompilerParams(dimension_semantics=dim_semantics,
                                vmem_limit_bytes=_VMEM_LIMIT)


def _pick_tile(n, cap, mult):
    """Largest divisor of n <= cap that is a multiple of `mult`; n itself if n <= cap
    (block == full dim is always legal). Falls back to a single full tile."""
    if n <= cap:
        return n
    for t in range(cap, mult - 1, -1):
        if n % t == 0 and t % mult == 0:
            return t
    return n


# ----------------------------------------------------------------------------
# Exact-ish GELU, matching nn.GELU() default (approximate='none').
# erf via Abramowitz & Stegun 7.1.26 (|err|<=1.5e-7 before the approx reciprocal);
# the divide goes to the EUP slot via pl.reciprocal(approx=True).
# ----------------------------------------------------------------------------
def _erf(x):
    a1, a2, a3, a4, a5 = (0.254829592, -0.284496736, 1.421413741,
                          -1.453152027, 1.061405429)
    ax = jnp.abs(x)
    t = pl.reciprocal(1.0 + 0.3275911 * ax, approx=True)
    poly = ((((a5 * t + a4) * t + a3) * t + a2) * t + a1) * t
    y = 1.0 - poly * jnp.exp(-ax * ax)
    return jnp.where(x >= 0.0, y, -y)


def _gelu(x):
    return 0.5 * x * (1.0 + _erf(x * 0.7071067811865476))


# ----------------------------------------------------------------------------
# Kernel 1: fused furthest-point-sampling + gather.
# Points kept resident in VMEM as (3, M) (lane-dense); per greedy iteration we
# compute distances only to the newly selected point and update a (1, M) running
# min scratch.  Output: the sampled GT points, (B, 3, n_sample).
# ----------------------------------------------------------------------------
def _fps_kernel(pts_ref, out_ref, samp_sc, mind_sc):
    pts = pts_ref[0]                                         # (3, M)
    M = pts.shape[1]
    n_sample = samp_sc.shape[1]
    lane_m = lax.broadcasted_iota(jnp.int32, (1, M), 1)
    lane_n = lax.broadcasted_iota(jnp.int32, (1, n_sample), 1)

    # Seed with point 0 (matches the CUDA furthest_point_sample seed).
    sel0 = pts[:, 0:1]                                       # (3, 1)
    samp_sc[...] = jnp.where(lane_n == 0, sel0, 0.0)
    d0 = pts[0:1, :] - sel0[0:1, :]
    d1 = pts[1:2, :] - sel0[1:2, :]
    d2 = pts[2:3, :] - sel0[2:3, :]
    mind_sc[...] = d0 * d0 + d1 * d1 + d2 * d2               # (1, M)

    @pl.loop(1, n_sample)
    def _(i):
        mind = mind_sc[...]
        maxv = jnp.max(mind)
        # First index attaining the max (same tie-break as argmax).
        nxt = jnp.min(jnp.where(mind == maxv, lane_m, M))
        sel = jnp.sum(jnp.where(lane_m == nxt, pts, 0.0), axis=1, keepdims=True)  # (3, 1)
        samp_sc[...] = jnp.where(lane_n == i, sel, samp_sc[...])
        e0 = pts[0:1, :] - sel[0:1, :]
        e1 = pts[1:2, :] - sel[1:2, :]
        e2 = pts[2:3, :] - sel[2:3, :]
        mind_sc[...] = jnp.minimum(mind, e0 * e0 + e1 * e1 + e2 * e2)

    out_ref[0] = samp_sc[...]


def fps_sample_gather(gt_points, n_sample):
    """furthest_point_sample + gather_points, fused. Returns (B, n_sample, 3)."""
    B, M, _ = gt_points.shape
    pts = jnp.transpose(gt_points, (0, 2, 1)).astype(jnp.float32)   # (B, 3, M)
    samp = pl.pallas_call(
        _fps_kernel,
        out_shape=jax.ShapeDtypeStruct((B, 3, n_sample), jnp.float32),
        grid=(B,),
        in_specs=[pl.BlockSpec((1, 3, M), lambda b: (b, 0, 0))],
        out_specs=pl.BlockSpec((1, 3, n_sample), lambda b: (b, 0, 0)),
        scratch_shapes=[pltpu.VMEM((3, n_sample), jnp.float32),
                        pltpu.VMEM((1, M), jnp.float32)],
        compiler_params=_cp("parallel"),
    )(pts)
    # TODO(synk): if n_sample > M this re-selects points (duplicates), matching the
    # behaviour of the original CUDA FPS kernel in that degenerate case.
    return jnp.transpose(samp, (0, 2, 1))                           # (B, n_sample, 3)


# ----------------------------------------------------------------------------
# Kernel 2: chamfer dist1 (min over sampled GT points) + exp(-dist1) confidence.
# Tiled grid (B, fine_tiles, gt_tiles) with an online running-min scratch.
# ----------------------------------------------------------------------------
def _chamfer_conf_kernel(f_ref, g_ref, conf_ref, mind_sc):
    gi = pl.program_id(2)

    @pl.when(gi == 0)
    def _():
        mind_sc[...] = jnp.full_like(mind_sc[...], jnp.inf)

    f = f_ref[0]                                             # (3, TN)  fine, lane-dense
    g = g_ref[0]                                             # (TG, 3)  GT, sublane-dense
    d0 = g[:, 0:1] - f[0:1, :]
    d1 = g[:, 1:2] - f[1:2, :]
    d2 = g[:, 2:3] - f[2:3, :]
    d = d0 * d0 + d1 * d1 + d2 * d2                          # (TG, TN) on the VPU
    mind_sc[...] = jnp.minimum(mind_sc[...], jnp.min(d, axis=0, keepdims=True))

    @pl.when(gi == pl.num_programs(2) - 1)
    def _():
        conf_ref[0] = jnp.exp(-mind_sc[...])


def chamfer_confidence(fine, gt_sampled):
    """dist1_i = min_j ||fine_i - gt_j||^2 ; returns exp(-dist1), shape (B, 1, N)."""
    B, _, N = fine.shape
    Ng = gt_sampled.shape[1]
    TN = _pick_tile(N, 2048, 128)
    TG = _pick_tile(Ng, 512, 8)
    return pl.pallas_call(
        _chamfer_conf_kernel,
        out_shape=jax.ShapeDtypeStruct((B, 1, N), jnp.float32),
        grid=(B, N // TN, Ng // TG),
        in_specs=[pl.BlockSpec((1, 3, TN), lambda b, fi, gi: (b, 0, fi)),
                  pl.BlockSpec((1, TG, 3), lambda b, fi, gi: (b, gi, 0))],
        out_specs=pl.BlockSpec((1, 1, TN), lambda b, fi, gi: (b, 0, fi)),
        scratch_shapes=[pltpu.VMEM((1, TN), jnp.float32)],
        compiler_params=_cp("parallel", "parallel", "arbitrary"),
    )(fine.astype(jnp.float32), gt_sampled.astype(jnp.float32))


# ----------------------------------------------------------------------------
# Kernel 3: 1x1-conv MLP head (conv_out1 -> GELU -> conv_out2 -> GELU -> conv_out3),
# tiled over the point axis; weights/biases stay resident (constant index maps).
# ----------------------------------------------------------------------------
def _mlp_kernel(x_ref, w1_ref, b1_ref, w2_ref, b2_ref, w3_ref, b3_ref, pred_ref):
    x = x_ref[0]                                                    # (Cin, TN)
    h1 = _gelu(jnp.dot(w1_ref[...], x, preferred_element_type=jnp.float32)
               + b1_ref[...])                                       # (H, TN)
    h2 = _gelu(jnp.dot(w2_ref[...], h1, preferred_element_type=jnp.float32)
               + b2_ref[...])                                       # (O, TN)
    # conv_out3 has a single output channel: VPU multiply + sublane reduce instead
    # of a wasteful 1-row MXU matmul.
    pred_ref[0] = jnp.sum(w3_ref[...] * h2, axis=0, keepdims=True) + b3_ref[...]


def mlp_confidence(x2_d, params):
    B, Cin, N = x2_d.shape
    H = params["w1"].shape[0]
    O = params["w2"].shape[0]
    TN = _pick_tile(N, 2048, 128)
    w3_col = params["w3"].reshape(O, 1)
    return pl.pallas_call(
        _mlp_kernel,
        out_shape=jax.ShapeDtypeStruct((B, 1, N), jnp.float32),
        grid=(B, N // TN),
        in_specs=[pl.BlockSpec((1, Cin, TN), lambda b, t: (b, 0, t)),
                  pl.BlockSpec((H, Cin), lambda b, t: (0, 0)),   # resident weights
                  pl.BlockSpec((H, 1), lambda b, t: (0, 0)),
                  pl.BlockSpec((O, H), lambda b, t: (0, 0)),
                  pl.BlockSpec((O, 1), lambda b, t: (0, 0)),
                  pl.BlockSpec((O, 1), lambda b, t: (0, 0)),
                  pl.BlockSpec((1, 1), lambda b, t: (0, 0))],
        out_specs=pl.BlockSpec((1, 1, TN), lambda b, t: (b, 0, t)),
        compiler_params=_cp("parallel", "parallel"),
    )(x2_d.astype(jnp.float32), params["w1"], params["b1"],
      params["w2"], params["b2"], w3_col, params["b3"])


# ----------------------------------------------------------------------------
# Parameters (deterministic init; shapes follow __init__ of the module).
# ----------------------------------------------------------------------------
def init_params(key, in_dim, hidden_dim, out_dim):
    ks = jax.random.split(key, 8)

    def u(k, shape, fan_in):
        bound = 1.0 / math.sqrt(fan_in)
        return jax.random.uniform(k, shape, jnp.float32, -bound, bound)

    return {
        # conv_1: Conv1d(in_dim, hidden_dim, 1)
        "w1": u(ks[0], (hidden_dim, in_dim), in_dim),
        "b1": u(ks[1], (hidden_dim, 1), in_dim),
        # conv_2: Conv1d(hidden_dim, out_dim, 1)
        "w2": u(ks[2], (out_dim, hidden_dim), hidden_dim),
        "b2": u(ks[3], (out_dim, 1), hidden_dim),
        # conv_shortcut: Conv1d(in_dim, out_dim, 1) -- declared in __init__, unused in forward
        "w_shortcut": u(ks[4], (out_dim, in_dim), in_dim),
        "b_shortcut": u(ks[5], (out_dim, 1), in_dim),
        # TODO(synk): reference forward calls undefined conv_out3; realized here as
        # Conv1d(out_dim, 1, 1) so pred.squeeze() matches the (B, N) confidence target.
        "w3": u(ks[6], (1, out_dim), out_dim),
        "b3": u(ks[7], (1, 1), out_dim),
    }


# ----------------------------------------------------------------------------
# Full forward pass.  epoch / is_training must be static Python values (the
# reference module uses Python `if` control flow on them).
# ----------------------------------------------------------------------------
def dynamic_confidence_filter_forward(params, fine, gt_points, x2_d, epoch, is_training):
    B, _, N = fine.shape

    # furthest_point_sample + gather_points (fused Pallas kernel, no (B,M,M) matrix)
    gt_sampled = fps_sample_gather(gt_points, N)             # (B, N, 3)

    # calc_all_dist -> dist1; confidence_score = exp(-dist1)
    conf3 = chamfer_confidence(fine, gt_sampled)             # (B, 1, N)
    conf = conf3[:, 0, :]                                    # (B, N)

    # conv_out3(GELU(conv_out2(GELU(conv_out1(x2_d)))))
    pred3 = mlp_confidence(x2_d, params)                     # (B, 1, N)

    # MSE(pred.squeeze(), confidence): tiny elementwise mean kept in plain JAX so
    # the MLP kernel's grid axes stay fully "parallel".
    loss = jnp.mean((pred3[:, 0, :] - conf) ** 2)

    fine_t = jnp.transpose(fine, (0, 2, 1))                  # (B, N, 3)
    if epoch < 50:
        filtered_fine = fine_t
    else:
        score = conf if is_training else pred3[:, 0, :]
        # sort_pc_according_to_conf: per-batch descending sort by confidence (JAX glue)
        order = jnp.argsort(-score, axis=1)
        filtered_fine = jnp.take_along_axis(fine_t, order[:, :, None], axis=1)

    return filtered_fine, loss


# ----------------------------------------------------------------------------
if __name__ == "__main__":
    key = jax.random.PRNGKey(0)
    B, N, M = 2, 16, 32
    in_dim = hidden_dim = out_dim = 16

    k1, k2, k3, kp = jax.random.split(key, 4)
    fine = jax.random.normal(k1, (B, 3, N), jnp.float32)        # (B, 3, n) fine point cloud
    gt_points = jax.random.normal(k2, (B, M, 3), jnp.float32)   # (B, M, 3) ground-truth points
    x2_d = jax.random.normal(k3, (B, in_dim, N), jnp.float32)   # (B, C_in, n) features

    params = init_params(kp, in_dim, hidden_dim, out_dim)

    filtered_fine, conf_loss = dynamic_confidence_filter_forward(
        params, fine, gt_points, x2_d, epoch=60, is_training=True)

    jax.block_until_ready((filtered_fine, conf_loss))
    assert filtered_fine.shape == (B, N, 3)
    assert conf_loss.shape == ()
    print("KERNEL_OK")
</pallas_src>

<mosaic_0001>
module attributes {stable_mosaic.version = 11 : i64} {
  func.func @_fps_kernel(%arg0: i32, %arg1: memref<1x3x32xf32, #tpu.memory_space<vmem>>, %arg2: memref<1x3x16xf32, #tpu.memory_space<vmem>>, %arg3: memref<3x16xf32, #tpu.memory_space<vmem>>, %arg4: memref<1x32xf32, #tpu.memory_space<vmem>>) attributes {dimension_semantics = [#tpu.dimension_semantics<parallel>], iteration_bounds = array<i64: 2>, scalar_prefetch = 0 : i64, scratch_operands = 2 : i64, tpu.core_type = #tpu.core_type<tc>, window_params = [{transform_indices = @transform_0, window_bounds = array<i64: 1, 3, 32>}, {transform_indices = @transform_1, window_bounds = array<i64: 1, 3, 16>}]} {
    %c0 = arith.constant 0 : index
    %c0_0 = arith.constant 0 : index
    %c0_1 = arith.constant 0 : index
    %0 = vector.load %arg1[%c0, %c0_0, %c0_1] : memref<1x3x32xf32, #tpu.memory_space<vmem>>, vector<1x3x32xf32>
    %1 = vector.shape_cast %0 : vector<1x3x32xf32> to vector<3x32xf32>
    %2 = tpu.iota {dimensions = array<i32: 1>} : vector<1x32xi32>
    %3 = tpu.iota {dimensions = array<i32: 1>} : vector<1x16xi32>
    %4 = vector.extract_strided_slice %1 {offsets = [0, 0], sizes = [3, 1], strides = [1, 1]} : vector<3x32xf32> to vector<3x1xf32>
    %c0_i32 = arith.constant 0 : i32
    %5 = vector.broadcast %c0_i32 : i32 to vector<1x16xi32>
    %6 = arith.cmpi eq, %3, %5 : vector<1x16xi32>
    %cst = arith.constant 0.000000e+00 : f32
    %7 = vector.shape_cast %6 : vector<1x16xi1> to vector<1x16xi1>
    %8 = vector.broadcast %7 : vector<1x16xi1> to vector<3x16xi1>
    %9 = vector.shape_cast %4 : vector<3x1xf32> to vector<3x1xf32>
    %10 = vector.broadcast %9 : vector<3x1xf32> to vector<3x16xf32>
    %11 = vector.broadcast %cst : f32 to vector<3x16xf32>
    %12 = arith.select %8, %10, %11 : vector<3x16xi1>, vector<3x16xf32>
    %c0_2 = arith.constant 0 : index
    %c0_3 = arith.constant 0 : index
    %13 = vector.load %arg3[%c0_2, %c0_3] : memref<3x16xf32, #tpu.memory_space<vmem>>, vector<3x16xf32>
    tpu.vector_store %arg3[%c0_2, %c0_3], %12 {strides = array<i32>} : memref<3x16xf32, #tpu.memory_space<vmem>>, vector<3x16xf32>,
    %14 = vector.extract_strided_slice %1 {offsets = [0, 0], sizes = [1, 32], strides = [1, 1]} : vector<3x32xf32> to vector<1x32xf32>
    %15 = vector.extract_strided_slice %4 {offsets = [0, 0], sizes = [1, 1], strides = [1, 1]} : vector<3x1xf32> to vector<1x1xf32>
    %16 = vector.broadcast %15 : vector<1x1xf32> to vector<1x32xf32>
    %17 = arith.subf %14, %16 : vector<1x32xf32>
    %18 = vector.extract_strided_slice %1 {offsets = [1, 0], sizes = [1, 32], strides = [1, 1]} : vector<3x32xf32> to vector<1x32xf32>
    %19 = vector.extract_strided_slice %4 {offsets = [1, 0], sizes = [1, 1], strides = [1, 1]} : vector<3x1xf32> to vector<1x1xf32>
    %20 = vector.broadcast %19 : vector<1x1xf32> to vector<1x32xf32>
    %21 = arith.subf %18, %20 : vector<1x32xf32>
    %22 = vector.extract_strided_slice %1 {offsets = [2, 0], sizes = [1, 32], strides = [1, 1]} : vector<3x32xf32> to vector<1x32xf32>
    %23 = vector.extract_strided_slice %4 {offsets = [2, 0], sizes = [1, 1], strides = [1, 1]} : vector<3x1xf32> to vector<1x1xf32>
    %24 = vector.broadcast %23 : vector<1x1xf32> to vector<1x32xf32>
    %25 = arith.subf %22, %24 : vector<1x32xf32>
    %26 = arith.mulf %17, %17 : vector<1x32xf32>
    %27 = arith.mulf %21, %21 : vector<1x32xf32>
    %28 = arith.addf %26, %27 : vector<1x32xf32>
    %29 = arith.mulf %25, %25 : vector<1x32xf32>
    %30 = arith.addf %28, %29 : vector<1x32xf32>
    %c0_4 = arith.constant 0 : index
    %c0_5 = arith.constant 0 : index
    %31 = vector.load %arg4[%c0_4, %c0_5] : memref<1x32xf32, #tpu.memory_space<vmem>>, vector<1x32xf32>
    tpu.vector_store %arg4[%c0_4, %c0_5], %30 {strides = array<i32>} : memref<1x32xf32, #tpu.memory_space<vmem>>, vector<1x32xf32>,
    %c0_i32_6 = arith.constant 0 : i32
    %c15_i32 = arith.constant 15 : i32
    %32 = arith.addi %c0_i32_6, %c15_i32 : i32
    %c1_i32 = arith.constant 1 : i32
    scf.for %arg5 = %c0_i32_6 to %32 step %c1_i32  : i32 {
      %c1_i32_13 = arith.constant 1 : i32
      %37 = arith.muli %arg5, %c1_i32_13 : i32
      %c1_i32_14 = arith.constant 1 : i32
      %38 = arith.addi %c1_i32_14, %37 : i32
      %c0_15 = arith.constant 0 : index
      %c0_16 = arith.constant 0 : index
      %39 = vector.load %arg4[%c0_15, %c0_16] : memref<1x32xf32, #tpu.memory_space<vmem>>, vector<1x32xf32>
      %40 = vector.shape_cast %39 : vector<1x32xf32> to vector<1x1x32xf32>
      %cst_17 = arith.constant dense<0xFF800000> : vector<1xf32>
      %41 = vector.multi_reduction <maximumf>, %40, %cst_17 [1, 2] : vector<1x1x32xf32> to vector<1xf32>
      %42 = vector.shape_cast %41 : vector<1xf32> to vector<1x1x1xf32>
      %43 = vector.extract %42[0, 0, 0] : f32 from vector<1x1x1xf32>
      %44 = vector.broadcast %43 : f32 to vector<1x32xf32>
      %45 = arith.cmpf oeq, %39, %44 : vector<1x32xf32>
      %c32_i32 = arith.constant 32 : i32
      %46 = vector.broadcast %c32_i32 : i32 to vector<1x32xi32>
      %47 = arith.select %45, %2, %46 : vector<1x32xi1>, vector<1x32xi32>
      %48 = vector.shape_cast %47 : vector<1x32xi32> to vector<1x1x32xi32>
      %cst_18 = arith.constant dense<2147483647> : vector<1xi32>
      %49 = vector.multi_reduction <minsi>, %48, %cst_18 [1, 2] : vector<1x1x32xi32> to vector<1xi32>
      %50 = vector.shape_cast %49 : vector<1xi32> to vector<1x1x1xi32>
      %51 = vector.extract %50[0, 0, 0] : i32 from vector<1x1x1xi32>
      %52 = vector.broadcast %51 : i32 to vector<1x32xi32>
      %53 = arith.cmpi eq, %2, %52 : vector<1x32xi32>
      %cst_19 = arith.constant 0.000000e+00 : f32
      %54 = vector.shape_cast %53 : vector<1x32xi1> to vector<1x32xi1>
      %55 = vector.broadcast %54 : vector<1x32xi1> to vector<3x32xi1>
      %56 = vector.broadcast %cst_19 : f32 to vector<3x32xf32>
      %57 = arith.select %55, %1, %56 : vector<3x32xi1>, vector<3x32xf32>
      %cst_20 = arith.constant dense<0.000000e+00> : vector<3xf32>
      %58 = vector.multi_reduction <add>, %57, %cst_20 [1] : vector<3x32xf32> to vector<3xf32>
      %59 = vector.shape_cast %58 : vector<3xf32> to vector<3x1xf32>
      %60 = vector.broadcast %38 : i32 to vector<1x16xi32>
      %61 = arith.cmpi eq, %3, %60 : vector<1x16xi32>
      %c0_21 = arith.constant 0 : index
      %c0_22 = arith.constant 0 : index
      %62 = vector.load %arg3[%c0_21, %c0_22] : memref<3x16xf32, #tpu.memory_space<vmem>>, vector<3x16xf32>
      %63 = vector.shape_cast %61 : vector<1x16xi1> to vector<1x16xi1>
      %64 = vector.broadcast %63 : vector<1x16xi1> to vector<3x16xi1>
      %65 = vector.shape_cast %59 : vector<3x1xf32> to vector<3x1xf32>
      %66 = vector.broadcast %65 : vector<3x1xf32> to vector<3x16xf32>
      %67 = arith.select %64, %66, %62 : vector<3x16xi1>, vector<3x16xf32>
      %c0_23 = arith.constant 0 : index
      %c0_24 = arith.constant 0 : index
      %68 = vector.load %arg3[%c0_23, %c0_24] : memref<3x16xf32, #tpu.memory_space<vmem>>, vector<3x16xf32>
      tpu.vector_store %arg3[%c0_23, %c0_24], %67 {strides = array<i32>} : memref<3x16xf32, #tpu.memory_space<vmem>>, vector<3x16xf32>,
      %69 = vector.extract_strided_slice %1 {offsets = [0, 0], sizes = [1, 32], strides = [1, 1]} : vector<3x32xf32> to vector<1x32xf32>
      %70 = vector.extract_strided_slice %59 {offsets = [0, 0], sizes = [1, 1], strides = [1, 1]} : vector<3x1xf32> to vector<1x1xf32>
      %71 = vector.broadcast %70 : vector<1x1xf32> to vector<1x32xf32>
      %72 = arith.subf %69, %71 : vector<1x32xf32>
      %73 = vector.extract_strided_slice %1 {offsets = [1, 0], sizes = [1, 32], strides = [1, 1]} : vector<3x32xf32> to vector<1x32xf32>
      %74 = vector.extract_strided_slice %59 {offsets = [1, 0], sizes = [1, 1], strides = [1, 1]} : vector<3x1xf32> to vector<1x1xf32>
      %75 = vector.broadcast %74 : vector<1x1xf32> to vector<1x32xf32>
      %76 = arith.subf %73, %75 : vector<1x32xf32>
      %77 = vector.extract_strided_slice %1 {offsets = [2, 0], sizes = [1, 32], strides = [1, 1]} : vector<3x32xf32> to vector<1x32xf32>
      %78 = vector.extract_strided_slice %59 {offsets = [2, 0], sizes = [1, 1], strides = [1, 1]} : vector<3x1xf32> to vector<1x1xf32>
      %79 = vector.broadcast %78 : vector<1x1xf32> to vector<1x32xf32>
      %80 = arith.subf %77, %79 : vector<1x32xf32>
      %81 = arith.mulf %72, %72 : vector<1x32xf32>
      %82 = arith.mulf %76, %76 : vector<1x32xf32>
      %83 = arith.addf %81, %82 : vector<1x32xf32>
      %84 = arith.mulf %80, %80 : vector<1x32xf32>
      %85 = arith.addf %83, %84 : vector<1x32xf32>
      %86 = arith.minimumf %39, %85 : vector<1x32xf32>
      %c0_25 = arith.constant 0 : index
      %c0_26 = arith.constant 0 : index
      %87 = vector.load %arg4[%c0_25, %c0_26] : memref<1x32xf32, #tpu.memory_space<vmem>>, vector<1x32xf32>
      tpu.vector_store %arg4[%c0_25, %c0_26], %86 {strides = array<i32>} : memref<1x32xf32, #tpu.memory_space<vmem>>, vector<1x32xf32>,
    }
    %c15_i32_7 = arith.constant 15 : i32
    %c0_8 = arith.constant 0 : index
    %c0_9 = arith.constant 0 : index
    %33 = vector.load %arg3[%c0_8, %c0_9] : memref<3x16xf32, #tpu.memory_space<vmem>>, vector<3x16xf32>
    %c0_10 = arith.constant 0 : index
    %c0_11 = arith.constant 0 : index
    %c0_12 = arith.constant 0 : index
    %34 = vector.load %arg2[%c0_10, %c0_11, %c0_12] : memref<1x3x16xf32, #tpu.memory_space<vmem>>, vector<1x3x16xf32>
    %35 = vector.shape_cast %34 : vector<1x3x16xf32> to vector<3x16xf32>
    %36 = vector.shape_cast %33 : vector<3x16xf32> to vector<1x3x16xf32>
    tpu.vector_store %arg2[%c0_10, %c0_11, %c0_12], %36 {strides = array<i32>} : memref<1x3x16xf32, #tpu.memory_space<vmem>>, vector<1x3x16xf32>,
    return
  }
  func.func @transform_0(%arg0: i32) -> (i32, i32, i32) {
    %c0_i32 = arith.constant 0 : i32
    %c0_i32_0 = arith.constant 0 : i32
    %c0_i32_1 = arith.constant 0 : i32
    return %arg0, %c0_i32, %c0_i32_0 : i32, i32, i32
  }
  func.func @transform_1(%arg0: i32) -> (i32, i32, i32) {
    %c0_i32 = arith.constant 0 : i32
    %c0_i32_0 = arith.constant 0 : i32
    %c0_i32_1 = arith.constant 0 : i32
    return %arg0, %c0_i32, %c0_i32_0 : i32, i32, i32
  }
}

</mosaic_0001>

<bundles_post_ra>
// kernel: tpu_custom_call.1
= control target key start
LH: loop header
LB: loop body
LE: loop exit
PB: predicated region body
PF: predicated region fallthrough
CT: control target
= control target key end

     0   :  { %s328_s6 = smov 0   ;;  %s375_s0 = inlined_call_operand.vmem [shape: f32[2,3,32], index: 0, kind: input, shape index: {}]   ;;  %s376_s1 = inlined_call_operand.vmem [shape: f32[2,3,16], index: 1, kind: output, shape index: {}]  }
   0x1 LB: > { %s270_s7 = sadd.s32 4294967295, %s311_s6   ;;  %p274_p0 = scmp.ge.s32.totalorder %s311_s6, 1  ;;  %s311_s6 = sphi %s328_s6, %s11_s6  }
   0x2   : > { %p86_p1 = scmp.lt.s32.totalorder %s311_s6, 3 }
   0x4   : > { %p87_p2 = pnand %p274_p0, %p86_p1 }
   0x5   : > { %p104_p3 = scmp.lt.s32.totalorder (!%p87_p2), %s270_s7, 1  ;;  %v317_v0 = vmov (!%p87_p2), 0   ;;  %v113_v2 = vlaneseq (!%p87_p2)  ;;  %vm124_vm1 = vcmask (!%p87_p2), 124928   ;;  %vm135_vm2 = vcmask (!%p87_p2), 253952   ;;  %s353_s15 = smov (!%p87_p2), 0  }
   0x6   : > { %90 = sbr.rel (%p87_p2) target bundleno = 887 (0x377), region = 24  ;;  %300 = vset.pattern.permute.xlu0 (!%p87_p2), %v317_v0 }
   0x7   : > { %v347_v3 = vand.u32 (!%p87_p2), 127, %v113_v2 }
   0x9   : > { %vm115_vm0 = vcmp.eq.s32.totalorder (!%p87_p2), %v347_v3, 0 }
   0xd   : > { %s378_s7 = smov (!%p104_p3, %s270_s7), 1 }
   0xe   : > { %s275_s8 = sshll.u32 %s378_s7, 2 }
   0xf   : > { %s107_s11 = scalar_lea.vmem %s375_s0, %s275_s8  ;;  %s342_s14 = scalar_lea.vmem %s376_s1, %s275_s8 }
  0x10   : > { %v344_v1 = vld [vmem:[%s107_s11] sm:$0x7] }
  0x11   : > { %120 = vperm.xlu0 %300, %v344_v1  }
  0x90   : > { %v121_v4 = vpop.permute.xlu0 %120 }
  0x91   : > { %v123_v5 = vsel %vm115_vm0, %v121_v4, 0.0  ;;  %v126_v6 = vsub.f32 %v344_v1, %v121_v4 }
  0x92   : > { %125 = vst.msk [vmem:[#allocation2] sm:$0x7] %vm124_vm1, %v123_v5 }
  0x93   : > { %v127_v7 = vmul.f32 %v126_v6, %v126_v6 }
  0x95   : > { %v129_v8 = vrot.slane %v127_v7, 1  ;;  %v132_v10 = vrot.slane %v127_v7, 2 }
  0x97   : > { %v131_v9 = vadd.f32 %v129_v8, %v127_v7 }
  0x99   : > { %v134_v11 = vadd.f32 %v132_v10, %v131_v9 }
  0x9b   : > { %136 = vst.msk [vmem:[#allocation3] sm:$0x1] %vm135_vm2, %v134_v11 }
  0x9c LB: >> { %vm188_vm8 = vcmask 256000   ;;  %s143_s15 = sadd.s32 1, %s315_s15   ;;  %v194_v45 = vld [vmem:[#allocation2] sm:$0x7]  ;;  %s315_s15 = sphi %s353_s15, %s143_s15  }
  0x9d   : >> { %v192_v44 = vstv %s143_s15  ;;  %p139_p4 = scmp.ge.s32.totalorder %s143_s15, 15  }
  0x9e   : >> { %vm193_vm10 = vcmp.eq.s32.totalorder %v347_v3, %v192_v44 }
  0xa2   : >> { %v144_v12 = vld [vmem:[#allocation3] sm:$0x1] }
  0xa3   : >> { %v145_v13 = vsel %vm135_vm2, %v144_v12, -inf }
  0xa4   : >> { %146 = vmax.xlane.f32.xlu0 %v145_v13 }
 0x131   : >> { %v147_v14 = vpop.xlane.xlu0 %146 }
 0x132   : >> { %v148_v15 = vrot.slane %v147_v14, 4 }
 0x134   : >> { %v149_v16 = vmax.f32 %v147_v14, %v148_v15 }
 0x136   : >> { %v150_v17 = vrot.slane %v149_v16, 2 }
 0x138   : >> { %v151_v18 = vmax.f32 %v149_v16, %v150_v17 }
 0x13a   : >> { %v152_v19 = vrot.slane %v151_v18, 1 }
 0x13c   : >> { %v153_v20 = vmax.f32 %v151_v18, %v152_v19 }
 0x13e   : >> { %279 = vpush %v153_v20 }
 0x16f   : >> { %s280_s16 = spop %279 }
 0x170   : >> { %v155_v21 = vstv %s280_s16 }
 0x171   : >> { %vm156_vm3 = vcmp.eq.f32.partialorder %v144_v12, %v155_v21 }
 0x172   : >> { %v157_v22 = vsel %vm156_vm3, %v347_v3, 32 }
 0x173   : >> { %v158_v23 = vsel %vm135_vm2, %v157_v22, 2147483647 }
 0x174   : >> { %v160_v24 = vshra.s32 %v158_v23, 16  ;;  %v159_v26 = vand.u32 65535, %v158_v23 }
 0x176   : >> { %v162_v25 = vcvt.s32.f32 %v160_v24  ;;  %v161_v28 = vcvt.s32.f32 %v159_v26 }
 0x178   : >> { %163 = vmin.xlane.f32.xlu0 %v162_v25 }
 0x205   : >> { %v164_v27 = vpop.xlane.xlu0 %163 }
 0x206   : >> { %vm165_vm4 = vcmp.eq.f32.partialorder %v162_v25, %v164_v27  ;;  %v170_v30 = vcvt.f32.s32 %v164_v27 }
 0x207   : >> { %v166_v29 = vsel %vm165_vm4, %v161_v28, inf }
 0x208   : >> { %167 = vmin.xlane.f32.xlu1 %v166_v29  ;;  %v171_v32 = vshll.u32 %v170_v30, 16 }
 0x295   : >> { %v168_v31 = vpop.xlane.xlu1 %167 }
 0x296   : >> { %v169_v33 = vcvt.f32.s32 %v168_v31 }
 0x298   : >> { %v172_v34 = vadd.s32 %v171_v32, %v169_v33 }
 0x29a   : >> { %v173_v35 = vrot.slane %v172_v34, 4 }
 0x29c   : >> { %vm174_vm5 = vcmp.lt.s32.totalorder %v172_v34, %v173_v35 }
 0x29d   : >> { %v175_v36 = vsel %vm174_vm5, %v172_v34, %v173_v35 }
 0x29e   : >> { %v176_v37 = vrot.slane %v175_v36, 2 }
 0x2a0   : >> { %vm177_vm6 = vcmp.lt.s32.totalorder %v175_v36, %v176_v37 }
 0x2a1   : >> { %v178_v38 = vsel %vm177_vm6, %v175_v36, %v176_v37 }
 0x2a2   : >> { %v179_v39 = vrot.slane %v178_v38, 1 }
 0x2a4   : >> { %vm180_vm7 = vcmp.lt.s32.totalorder %v178_v38, %v179_v39 }
 0x2a5   : >> { %v181_v40 = vsel %vm180_vm7, %v178_v38, %v179_v39 }
 0x2a6   : >> { %281 = vpush %v181_v40 }
 0x2d7   : >> { %s282_s17 = spop %281 }
 0x2d8   : >> { %v183_v41 = vstv %s282_s17 }
 0x2d9   : >> { %vm184_vm9 = vcmp.eq.s32.totalorder %v347_v3, %v183_v41 }
 0x2da   : >> { %v187_v42 = vsel %vm184_vm9, %v344_v1, 0.0 }
 0x2db   : >> { %v189_v43 = vsel %vm188_vm8, %v187_v42, 0.0 }
 0x2dc   : >> { %190 = vadd.xlane.f32.xlu1 %v189_v43 }
 0x369   : >> { %v191_v46 = vpop.xlane.xlu1 %190 }
 0x36a   : >> { %v197_v47 = vsel %vm193_vm10, %v191_v46, %v194_v45  ;;  %v199_v48 = vsub.f32 %v344_v1, %v191_v46 }
 0x36b   : >> { %198 = vst.msk [vmem:[#allocation2] sm:$0x7] %vm124_vm1, %v197_v47 }
 0x36c   : >> { %v200_v49 = vmul.f32 %v199_v48, %v199_v48 }
 0x36e   : >> { %v202_v50 = vrot.slane %v200_v49, 1  ;;  %v205_v52 = vrot.slane %v200_v49, 2 }
 0x370   : >> { %v204_v51 = vadd.f32 %v202_v50, %v200_v49  ;;  %141 = sbr.rel (!%p139_p4) target bundleno = 156 (0x9c), region = 61 }
 0x372   : >> { %v207_v53 = vadd.f32 %v205_v52, %v204_v51  ;;  %v210_v55 = vld [vmem:[#allocation2] sm:$0x7] (%p139_p4) }
 0x373   : > { %211 = vst.msk [vmem:[%s342_s14] sm:$0x7] (%p139_p4), %vm124_vm1, %v210_v55 }
 0x374   : >> { %v208_v54 = vmin.f32 %v144_v12, %v207_v53 }
 0x376   : >> { %209 = vst.msk [vmem:[#allocation3] sm:$0x1] %vm135_vm2, %v208_v54 }
 0x377 PF: > { %s11_s6 = sadd.s32 1, %s311_s6  }
 0x378   : > { %p8_p5 = scmp.ge.s32.totalorder %s11_s6, 4  }
 0x37a   :  { %10 = sbr.rel (!%p8_p5) target bundleno = 1 (0x1), region = 72 }

</bundles_post_ra>
